<compile_context>
chip_gen: v7x
topology: tpu7x:2x2x1
jax: 0.10.0
libtpu: 0.0.40
codegen_flags: <defaults>
</compile_context>

<pallas_src>
import functools

import jax
import jax.numpy as jnp
from jax.experimental import pallas as pl
from jax.experimental.pallas import tpu as pltpu


# ---------------------------------------------------------------------------
# Static (host-side) construction of the compare-exchange network.
# ---------------------------------------------------------------------------
def _batcher_pairs(n):
    """Batcher odd-even merge sort comparators for n inputs.  Built for the
    next power of two; comparators touching the virtual +inf padding
    (index >= n) are dropped, which leaves a valid n-sorter."""
    if n < 2:
        return []
    m = 1
    while m < n:
        m *= 2
    pairs = []

    def merge(lo, hi, r):
        step = r * 2
        if step < hi - lo:
            merge(lo, hi, step)
            merge(lo + r, hi, step)
            for i in range(lo + r, hi - r, step):
                pairs.append((i, i + r))
        else:
            pairs.append((lo, lo + r))

    def sort(lo, hi):
        if hi - lo >= 1:
            mid = lo + (hi - lo) // 2
            sort(lo, mid)
            sort(mid + 1, hi)
            merge(lo, hi, 1)

    sort(0, m - 1)
    return [(i, j) for (i, j) in pairs if j < n]


def _prune_network(pairs, needed_outputs):
    """Backward needed-set pruning: keep only comparators that can influence
    the wires in `needed_outputs`; the pruned network produces exactly the
    same values as the full network on those wires."""
    needed = set(needed_outputs)
    kept = []
    for (i, j) in reversed(pairs):
        if i in needed or j in needed:
            kept.append((i, j))
            needed.add(i)
            needed.add(j)
    kept.reverse()
    return kept


def _plan_order_stats(n_reads):
    """Static plan for {min, median, max}: either one pruned selection network
    giving all three, or a median-only network plus min/max trees, whichever
    needs fewer VALU issues."""
    med_idx = (n_reads - 1) // 2                    # torch.median: lower middle
    full = _batcher_pairs(n_reads)
    net_all = _prune_network(full, {0, med_idx, n_reads - 1})
    net_med = _prune_network(full, {med_idx})
    cost_all = 2 * len(net_all)
    cost_med = 2 * len(net_med) + 2 * (n_reads - 1)
    if cost_all <= cost_med:
        return net_all, med_idx, False              # min/max read off the network
    return net_med, med_idx, True                   # min/max via reduction trees


def _tree_reduce(vals, op):
    """Balanced pairwise reduction (same op count, lower dependency depth)."""
    vals = list(vals)
    while len(vals) > 1:
        nxt = []
        for i in range(0, len(vals) - 1, 2):
            nxt.append(op(vals[i], vals[i + 1]))
        if len(vals) % 2:
            nxt.append(vals[-1])
        vals = nxt
    return vals[0]


# ---------------------------------------------------------------------------
# Tiling selection (VMEM-aware, generation-aware).
# ---------------------------------------------------------------------------
def _round_up(v, m):
    return -(-v // m) * m


def _vmem_budget_bytes():
    # Stay well inside the smallest scoped default (16 MiB on v5e) so no
    # vmem_limit override is required on any generation; be stricter on v7x
    # (64 MiB physical) via the capacity query.
    cap = 64 * 1024 * 1024
    try:
        cap = int(pltpu.get_tpu_info().vmem_capacity_bytes)
    except Exception:
        pass
    return min(12 * 1024 * 1024, cap // 8)


def _choose_tiling(n_sites, n_reads, n_channels, itemsize, site_tile=None):
    R, C = n_reads, n_channels
    chunk = 8 if R >= 16 else 16                       # bounds live slab vregs

    if site_tile is not None:                          # explicit override (tests)
        assert site_tile % chunk == 0
        n_chunks = site_tile // chunk
        unroll = next(u for u in (8, 7, 6, 5, 4, 3, 2, 1) if n_chunks % u == 0)
        return site_tile, chunk, n_chunks, unroll

    # double-buffered input + output block bytes per site
    per_site = (R * C + 5 * C) * max(itemsize, 4) * 2
    budget = _vmem_budget_bytes()
    max_tile = min(4096, max(chunk, budget // per_site))
    max_tile = max(chunk, (max_tile // chunk) * chunk)

    needed = _round_up(n_sites, chunk)
    if needed <= max_tile:
        # Single grid step; pick a tile with a friendly unroll factor as long
        # as the padding it adds stays under ~12.5%.
        site_tile, unroll = needed, 1
        for u in (8, 4, 2):
            cand = _round_up(needed, chunk * u)
            if cand <= max(max_tile, needed) and (cand - needed) * 8 <= needed:
                site_tile, unroll = cand, u
                break
        n_chunks = site_tile // chunk
        if unroll == 1:
            unroll = next(u for u in (8, 7, 6, 5, 4, 3, 2, 1) if n_chunks % u == 0)
    else:
        # Large input: biggest VMEM-safe tile, multiple of chunk*8 so the
        # inner loop unrolls by 8.
        group = chunk * 8
        site_tile = max(group, (max_tile // group) * group)
        n_chunks = site_tile // chunk
        unroll = 8
    return site_tile, chunk, n_chunks, unroll


# ---------------------------------------------------------------------------
# Kernel.
# ---------------------------------------------------------------------------
def _make_kernel(n_reads, n_channels, chunk, n_chunks, unroll,
                 sort_pairs, med_idx, minmax_trees):
    R, C = n_reads, n_channels
    inv_r = 1.0 / R
    inv_rm1 = 1.0 / (R - 1)
    assert n_chunks % unroll == 0
    n_groups = n_chunks // unroll

    def process(x_ref, o_ref, s0):
        rows = pl.ds(s0, chunk)
        # One wide, lane-dense load of the flat (chunk, R*C) rows; the R read
        # slabs are static lane slices of the value.
        t = x_ref[rows, :].astype(jnp.float32)
        reads = [t[:, r * C:(r + 1) * C] for r in range(R)]

        # --- mean: tree-shaped sum (R-1 adds) ---
        mean = _tree_reduce(reads, jnp.add) * inv_r

        # --- unbiased variance, two-pass (matches torch.var default ddof=1) ---
        diffs = [r_ - mean for r_ in reads]
        sq = [d * d for d in diffs]
        var = _tree_reduce(sq, jnp.add) * inv_rm1

        # --- order statistics via the pruned compare-exchange network ---
        v = list(reads)
        for (i, j) in sort_pairs:
            a, b = v[i], v[j]
            v[i] = jnp.minimum(a, b)
            v[j] = jnp.maximum(a, b)
        med = v[med_idx]                       # lower middle == torch.median
        if minmax_trees:
            mn = _tree_reduce(reads, jnp.minimum)
            mx = _tree_reduce(reads, jnp.maximum)
        else:
            mn = v[0]
            mx = v[R - 1]

        # Single lane-dense store per chunk, torch.cat order.
        out = jnp.concatenate([mean, var, mx, mn, med], axis=-1)
        o_ref[rows, :] = out.astype(o_ref.dtype)

    def kernel(x_ref, o_ref):
        if n_groups == 1:
            for u in range(unroll):            # fully unrolled
                process(x_ref, o_ref, u * chunk)
        else:
            group_rows = unroll * chunk

            @pl.loop(0, n_groups)
            def _(g):
                base = pl.multiple_of(g * group_rows, group_rows)
                for u in range(unroll):        # statically unrolled inside the loop
                    process(x_ref, o_ref, base + u * chunk)

    return kernel


# ---------------------------------------------------------------------------
# Wrapper.
# ---------------------------------------------------------------------------
@functools.partial(
    jax.jit, static_argnames=("n_reads_per_site", "input_channel", "site_tile"))
def summary_stats_aggregator(x, *, n_reads_per_site, input_channel, site_tile=None):
    """x: (n_sites * n_reads_per_site, input_channel) -> (n_sites, 5*input_channel)."""
    R, C = n_reads_per_site, input_channel
    assert R >= 2, "n_reads_per_site must be >= 2 for unbiased variance"

    # Free, layout-preserving view: (S*R, C) row-major == (S, R*C) row-major.
    x2 = x.reshape(-1, R * C)
    n_sites = x2.shape[0]
    itemsize = jnp.dtype(x.dtype).itemsize

    site_tile, chunk, n_chunks, unroll = _choose_tiling(
        n_sites, R, C, itemsize, site_tile)

    n_pad = _round_up(n_sites, site_tile)
    if n_pad != n_sites:
        x2 = jnp.pad(x2, ((0, n_pad - n_sites), (0, 0)))

    pairs, med_idx, minmax_trees = _plan_order_stats(R)
    kernel = _make_kernel(R, C, chunk, n_chunks, unroll,
                          pairs, med_idx, minmax_trees)

    flops = n_sites * C * (3 * R + 2 * len(pairs)
                           + (2 * (R - 1) if minmax_trees else 0) + 4)
    bytes_accessed = n_sites * (R * C + 5 * C) * itemsize

    out = pl.pallas_call(
        kernel,
        out_shape=jax.ShapeDtypeStruct((n_pad, 5 * C), x.dtype),
        grid=(n_pad // site_tile,),
        in_specs=[pl.BlockSpec((site_tile, R * C), lambda i: (i, 0))],
        out_specs=pl.BlockSpec((site_tile, 5 * C), lambda i: (i, 0)),
        compiler_params=pltpu.CompilerParams(dimension_semantics=("parallel",)),
        cost_estimate=pl.CostEstimate(flops=int(flops), transcendentals=0,
                                      bytes_accessed=int(bytes_accessed)),
    )(x2)

    if n_pad != n_sites:
        out = out[:n_sites]
    return out


def _reference(x, n_reads_per_site, input_channel):
    """Pure-JAX reference mirroring the PyTorch semantics."""
    x3 = x.reshape(-1, n_reads_per_site, input_channel)
    mean = jnp.mean(x3, axis=1)
    var = jnp.var(x3, axis=1, ddof=1)                 # torch.var: unbiased
    mx = jnp.max(x3, axis=1)
    mn = jnp.min(x3, axis=1)
    srt = jnp.sort(x3, axis=1)
    med = srt[:, (n_reads_per_site - 1) // 2]         # torch.median: lower middle
    return jnp.concatenate([mean, var, mx, mn, med], axis=1)


# TODO(synk): the dict-input branch of forward ({'X': x, 'kmer': k}) is plain
# Python routing around aggregate(); handled outside the kernel if needed.

if __name__ == "__main__":
    key = jax.random.PRNGKey(0)
    configs = [
        # (input_channel, n_reads_per_site, n_sites, forced_site_tile)
        (32, 8, 16, None),    # single block, single chunk
        (32, 8, 64, None),    # single block, 4 fully-unrolled chunks
        (16, 20, 32, None),   # module-default R=20 -> pruned Batcher network
        (8, 5, 10, None),     # odd R, non-multiple-of-8 sites -> padding path
        (16, 20, 320, 160),   # forced tile: grid=2, pl.loop over chunk groups
    ]
    for idx, (C, R, S, tile) in enumerate(configs):
        key, sub = jax.random.split(key)
        x = jax.random.normal(sub, (S * R, C), dtype=jnp.float32)

        out = summary_stats_aggregator(
            x, n_reads_per_site=R, input_channel=C, site_tile=tile)
        out = jax.block_until_ready(out)

        ref = _reference(x, R, C)
        assert out.shape == (S, 5 * C), (out.shape, (S, 5 * C))
        assert jnp.allclose(out, ref, atol=1e-5, rtol=1e-5), (
            f"mismatch vs reference in config {idx}: C={C} R={R} S={S}"
        )

    print("KERNEL_OK")
</pallas_src>

<mosaic_0001>
module attributes {stable_mosaic.version = 11 : i64} {
  func.func @kernel(%arg0: i32, %arg1: memref<16x256xf32, #tpu.memory_space<vmem>>, %arg2: memref<16x160xf32, #tpu.memory_space<vmem>>) attributes {dimension_semantics = [#tpu.dimension_semantics<parallel>], iteration_bounds = array<i64: 1>, scalar_prefetch = 0 : i64, scratch_operands = 0 : i64, tpu.core_type = #tpu.core_type<tc>, window_params = [{transform_indices = @transform_0, window_bounds = array<i64: 16, 256>}, {transform_indices = @transform_1, window_bounds = array<i64: 16, 160>}]} {
    %c0 = arith.constant 0 : index
    %c0_0 = arith.constant 0 : index
    %0 = vector.load %arg1[%c0, %c0_0] : memref<16x256xf32, #tpu.memory_space<vmem>>, vector<16x256xf32>
    %1 = vector.extract_strided_slice %0 {offsets = [0, 0], sizes = [16, 32], strides = [1, 1]} : vector<16x256xf32> to vector<16x32xf32>
    %2 = vector.extract_strided_slice %0 {offsets = [0, 32], sizes = [16, 32], strides = [1, 1]} : vector<16x256xf32> to vector<16x32xf32>
    %3 = vector.extract_strided_slice %0 {offsets = [0, 64], sizes = [16, 32], strides = [1, 1]} : vector<16x256xf32> to vector<16x32xf32>
    %4 = vector.extract_strided_slice %0 {offsets = [0, 96], sizes = [16, 32], strides = [1, 1]} : vector<16x256xf32> to vector<16x32xf32>
    %5 = vector.extract_strided_slice %0 {offsets = [0, 128], sizes = [16, 32], strides = [1, 1]} : vector<16x256xf32> to vector<16x32xf32>
    %6 = vector.extract_strided_slice %0 {offsets = [0, 160], sizes = [16, 32], strides = [1, 1]} : vector<16x256xf32> to vector<16x32xf32>
    %7 = vector.extract_strided_slice %0 {offsets = [0, 192], sizes = [16, 32], strides = [1, 1]} : vector<16x256xf32> to vector<16x32xf32>
    %8 = vector.extract_strided_slice %0 {offsets = [0, 224], sizes = [16, 32], strides = [1, 1]} : vector<16x256xf32> to vector<16x32xf32>
    %9 = arith.addf %1, %2 : vector<16x32xf32>
    %10 = arith.addf %3, %4 : vector<16x32xf32>
    %11 = arith.addf %5, %6 : vector<16x32xf32>
    %12 = arith.addf %7, %8 : vector<16x32xf32>
    %13 = arith.addf %9, %10 : vector<16x32xf32>
    %14 = arith.addf %11, %12 : vector<16x32xf32>
    %15 = arith.addf %13, %14 : vector<16x32xf32>
    %cst = arith.constant 1.250000e-01 : f32
    %16 = vector.broadcast %cst : f32 to vector<16x32xf32>
    %17 = arith.mulf %15, %16 : vector<16x32xf32>
    %18 = arith.subf %1, %17 : vector<16x32xf32>
    %19 = arith.subf %2, %17 : vector<16x32xf32>
    %20 = arith.subf %3, %17 : vector<16x32xf32>
    %21 = arith.subf %4, %17 : vector<16x32xf32>
    %22 = arith.subf %5, %17 : vector<16x32xf32>
    %23 = arith.subf %6, %17 : vector<16x32xf32>
    %24 = arith.subf %7, %17 : vector<16x32xf32>
    %25 = arith.subf %8, %17 : vector<16x32xf32>
    %26 = arith.mulf %18, %18 : vector<16x32xf32>
    %27 = arith.mulf %19, %19 : vector<16x32xf32>
    %28 = arith.mulf %20, %20 : vector<16x32xf32>
    %29 = arith.mulf %21, %21 : vector<16x32xf32>
    %30 = arith.mulf %22, %22 : vector<16x32xf32>
    %31 = arith.mulf %23, %23 : vector<16x32xf32>
    %32 = arith.mulf %24, %24 : vector<16x32xf32>
    %33 = arith.mulf %25, %25 : vector<16x32xf32>
    %34 = arith.addf %26, %27 : vector<16x32xf32>
    %35 = arith.addf %28, %29 : vector<16x32xf32>
    %36 = arith.addf %30, %31 : vector<16x32xf32>
    %37 = arith.addf %32, %33 : vector<16x32xf32>
    %38 = arith.addf %34, %35 : vector<16x32xf32>
    %39 = arith.addf %36, %37 : vector<16x32xf32>
    %40 = arith.addf %38, %39 : vector<16x32xf32>
    %cst_1 = arith.constant 0.142857149 : f32
    %41 = vector.broadcast %cst_1 : f32 to vector<16x32xf32>
    %42 = arith.mulf %40, %41 : vector<16x32xf32>
    %43 = arith.minimumf %1, %2 : vector<16x32xf32>
    %44 = arith.maximumf %1, %2 : vector<16x32xf32>
    %45 = arith.minimumf %3, %4 : vector<16x32xf32>
    %46 = arith.maximumf %3, %4 : vector<16x32xf32>
    %47 = arith.minimumf %43, %45 : vector<16x32xf32>
    %48 = arith.maximumf %43, %45 : vector<16x32xf32>
    %49 = arith.minimumf %44, %46 : vector<16x32xf32>
    %50 = arith.maximumf %44, %46 : vector<16x32xf32>
    %51 = arith.minimumf %49, %48 : vector<16x32xf32>
    %52 = arith.maximumf %49, %48 : vector<16x32xf32>
    %53 = arith.minimumf %5, %6 : vector<16x32xf32>
    %54 = arith.maximumf %5, %6 : vector<16x32xf32>
    %55 = arith.minimumf %7, %8 : vector<16x32xf32>
    %56 = arith.maximumf %7, %8 : vector<16x32xf32>
    %57 = arith.minimumf %53, %55 : vector<16x32xf32>
    %58 = arith.maximumf %53, %55 : vector<16x32xf32>
    %59 = arith.minimumf %54, %56 : vector<16x32xf32>
    %60 = arith.maximumf %54, %56 : vector<16x32xf32>
    %61 = arith.minimumf %59, %58 : vector<16x32xf32>
    %62 = arith.maximumf %59, %58 : vector<16x32xf32>
    %63 = arith.minimumf %47, %57 : vector<16x32xf32>
    %64 = arith.maximumf %47, %57 : vector<16x32xf32>
    %65 = arith.minimumf %52, %62 : vector<16x32xf32>
    %66 = arith.maximumf %65, %64 : vector<16x32xf32>
    %67 = arith.maximumf %51, %61 : vector<16x32xf32>
    %68 = arith.minimumf %50, %60 : vector<16x32xf32>
    %69 = arith.maximumf %50, %60 : vector<16x32xf32>
    %70 = arith.minimumf %68, %67 : vector<16x32xf32>
    %71 = arith.minimumf %70, %66 : vector<16x32xf32>
    %72 = tpu.concatenate %17, %42, %69, %63, %71 in 1 : vector<16x32xf32>, vector<16x32xf32>, vector<16x32xf32>, vector<16x32xf32>, vector<16x32xf32> -> vector<16x160xf32>
    %c0_2 = arith.constant 0 : index
    %c0_3 = arith.constant 0 : index
    %73 = vector.load %arg2[%c0_2, %c0_3] : memref<16x160xf32, #tpu.memory_space<vmem>>, vector<16x160xf32>
    tpu.vector_store %arg2[%c0_2, %c0_3], %72 {strides = array<i32>} : memref<16x160xf32, #tpu.memory_space<vmem>>, vector<16x160xf32>,
    return
  }
  func.func @transform_0(%arg0: i32) -> (i32, i32) {
    %c0_i32 = arith.constant 0 : i32
    %c0_i32_0 = arith.constant 0 : i32
    return %arg0, %c0_i32 : i32, i32
  }
  func.func @transform_1(%arg0: i32) -> (i32, i32) {
    %c0_i32 = arith.constant 0 : i32
    %c0_i32_0 = arith.constant 0 : i32
    return %arg0, %c0_i32 : i32, i32
  }
}

</mosaic_0001>

<bundles_post_ra>
// kernel: summary_stats_aggregator.1
= control target key start
LH: loop header
LB: loop body
LE: loop exit
PB: predicated region body
PF: predicated region fallthrough
CT: control target
= control target key end

     0   :  { %s338_s10 = smov 96   ;;  %s540_s0 = inlined_call_operand.vmem [shape: f32[16,256], index: 0, kind: input, shape index: {}]   ;;  %s541_s1 = inlined_call_operand.hbm [shape: f32[16,160], index: 1, kind: output, shape index: {}]  }
   0x1   :  { %v357_v0 = vld [vmem:[%s540_s0] sm:$0xff]  ;;  %v362_v1 = vld [vmem:[%s540_s0 + $0x8] sm:$0xff] }
   0x2   :  { %15 = vrot.lane.b32.xlu0 %v357_v0, %s338_s10  ;;  %25 = vrot.lane.b32.xlu1 %v362_v1, %s338_s10 }
   0x3   :  { %6 = vsyncpa [#allocation3], 0  ;;  %v371_v2 = vld [vmem:[%s540_s0 + $0x10] sm:$0xff]  ;;  %v376_v3 = vld [vmem:[%s540_s0 + $0x18] sm:$0xff]  ;;  %s339_s15 = smov 64   ;;  %s340_s0 = smov 32  }
   0x4   :  { %vm279_vm0 = vcmask 261120   ;;  %vm282_vm1 = vcmask 523264   ;;  %vm285_vm2 = vcmask 785408   ;;  %s341_s16 = smov [#allocation2]  }
   0x5   :  { %s297_s17 = sshll.u32 %s341_s16, 4  ;;  %s298_s17 = int_to_ptr.vmem [resolvable:$true] %s297_s17 }
   0x6   :  { %17 = vrot.lane.b32.xlu0 %v371_v2, %s338_s10  ;;  %27 = vrot.lane.b32.xlu1 %v376_v3, %s338_s10  ;;  %s314_s18 = scalar_lea.vmem %s298_s17, 512  ;;  %p319_p1 = scmp.lt.s32.totalorder %s298_s17, %s298_s17 }
   0x7   :  { %p315_p0 = scmp.ne.s32.totalorder %s298_s17, %s314_s18  ;;  %p320_p2 = scmp.lt.s32.totalorder %s314_s18, %s314_s18 }
   0x9   :  { %p321_p3 = por %p320_p2, %p319_p1 }
   0xb   :  { %p322_p4 = pnand %p321_p3, %p315_p0 }
  0x74   :  { %v16_v4 = vpop.permute.xlu0 %15  ;;  %v382_v5 = vpop.permute.xlu1 %25 }
  0x75   :  { %v21_v6 = vadd.f32 %v16_v4, %v357_v0  ;;  %v31_v7 = vadd.f32 %v382_v5, %v362_v1  ;;  %v420_v34 = vmax.f32 %v357_v0, %v16_v4  ;;  %v430_v36 = vmax.f32 %v362_v1, %v382_v5 }
  0x76   :  { %v441_v39 = vmin.f32 %v357_v0, %v16_v4 }
  0x77   :  { %35 = vrot.lane.b32.xlu0 %v21_v6, %s339_s15 }
  0x78   :  { %v18_v8 = vpop.permute.xlu0 %17  ;;  %v388_v9 = vpop.permute.xlu1 %27 }
  0x79   :  { %v22_v10 = vadd.f32 %v18_v8, %v371_v2  ;;  %v32_v11 = vadd.f32 %v388_v9, %v376_v3  ;;  %v426_v35 = vmax.f32 %v371_v2, %v18_v8  ;;  %v438_v38 = vmax.f32 %v376_v3, %v388_v9 }
  0x7a   :  { %v449_v42 = vmin.f32 %v371_v2, %v18_v8 }
  0x7b   :  { %45 = vrot.lane.b32.xlu0 %v31_v7, %s339_s15  ;;  %37 = vrot.lane.b32.xlu1 %v22_v10, %s339_s15 }
  0x7f   :  { %47 = vrot.lane.b32.xlu1 %v32_v11, %s339_s15 }
  0xe9   :  { %v36_v12 = vpop.permute.xlu0 %35 }
  0xea   :  { %v41_v15 = vadd.f32 %v36_v12, %v21_v6 }
  0xed   :  { %v38_v13 = vpop.permute.xlu1 %37  ;;  %v46_v14 = vpop.permute.xlu0 %45 }
  0xee   :  { %v51_v16 = vadd.f32 %v46_v14, %v31_v7  ;;  %v42_v19 = vadd.f32 %v38_v13, %v22_v10  ;;  %v206_v13 = vmin.f32 %v376_v3, %v388_v9 }
  0xf0   :  { %v53_v17 = vadd.f32 %v51_v16, %v41_v15 }
  0xf1   :  { %v48_v18 = vpop.permute.xlu1 %47 }
  0xf2   :  { %v396_v20 = vmul.f32 0.125, %v53_v17  ;;  %v52_v21 = vadd.f32 %v48_v18, %v32_v11  ;;  %v205_v11 = vmin.f32 %v362_v1, %v382_v5 }
  0xf4   :  { %v54_v22 = vadd.f32 %v52_v21, %v42_v19  ;;  %77 = vrot.lane.b32.xlu0 %v396_v20, %s338_s10 }
  0xf6   :  { %v400_v23 = vmul.f32 0.125, %v54_v22 }
  0xf8   :  { %79 = vrot.lane.b32.xlu1 %v400_v23, %s338_s10  ;;  %61 = vrot.lane.b32.xlu0 %v396_v20, %s340_s0 }
  0xfc   :  { %63 = vrot.lane.b32.xlu1 %v400_v23, %s340_s0  ;;  %69 = vrot.lane.b32.xlu0 %v396_v20, %s339_s15 }
 0x100   :  { %71 = vrot.lane.b32.xlu1 %v400_v23, %s339_s15 }
 0x166   :  { %v78_v24 = vpop.permute.xlu0 %77 }
 0x167   :  { %v83_v25 = vsub.f32 %v357_v0, %v78_v24  ;;  %v91_v27 = vsub.f32 %v362_v1, %v78_v24 }
 0x169   :  { %v99_v26 = vmul.f32 %v83_v25, %v83_v25  ;;  %v107_v32 = vmul.f32 %v91_v27, %v91_v27 }
 0x16a   :  { %v80_v28 = vpop.permute.xlu1 %79  ;;  %v62_v37 = vpop.permute.xlu0 %61 }
 0x16b   :  { %v84_v29 = vsub.f32 %v371_v2, %v80_v28  ;;  %121 = vrot.lane.b32.xlu0 %v99_v26, %s338_s10  ;;  %v92_v30 = vsub.f32 %v376_v3, %v80_v28  ;;  %v67_v40 = vsub.f32 %v357_v0, %v62_v37  ;;  %v87_v44 = vsub.f32 %v362_v1, %v62_v37 }
 0x16c   :  { %v86_v37 = vsub.f32 %v376_v3, %v400_v23 }
 0x16d   :  { %v100_v31 = vmul.f32 %v84_v29, %v84_v29  ;;  %v108_v33 = vmul.f32 %v92_v30, %v92_v30  ;;  %v95_v45 = vmul.f32 %v67_v40, %v67_v40  ;;  %v103_v48 = vmul.f32 %v87_v44, %v87_v44 }
 0x16e   :  { %v64_v41 = vpop.permute.xlu1 %63  ;;  %v70_v50 = vpop.permute.xlu0 %69  ;;  %v57_v29 = vsub.f32 %v357_v0, %v396_v20  ;;  %v85_v30 = vsub.f32 %v362_v1, %v396_v20 }
 0x16f   :  { %123 = vrot.lane.b32.xlu1 %v100_v31, %s338_s10  ;;  %141 = vrot.lane.b32.xlu0 %v107_v32, %s338_s10  ;;  %v68_v43 = vsub.f32 %v371_v2, %v64_v41  ;;  %v88_v46 = vsub.f32 %v376_v3, %v64_v41  ;;  %v75_v51 = vsub.f32 %v357_v0, %v70_v50 }
 0x170   :  { %v89_v55 = vsub.f32 %v362_v1, %v70_v50  ;;  %v93_v40 = vmul.f32 %v57_v29, %v57_v29  ;;  %v101_v41 = vmul.f32 %v85_v30, %v85_v30 }
 0x171   :  { %v96_v47 = vmul.f32 %v68_v43, %v68_v43  ;;  %v104_v49 = vmul.f32 %v88_v46, %v88_v46  ;;  %v97_v53 = vmul.f32 %v75_v51, %v75_v51 }
 0x172   :  { %v72_v52 = vpop.permute.xlu1 %71  ;;  %v105_v60 = vmul.f32 %v89_v55, %v89_v55 }
 0x173   :  { %143 = vrot.lane.b32.xlu1 %v108_v33, %s338_s10  ;;  %191 = vrot.lane.b32.xlu0 %v420_v34, %s339_s15  ;;  %v76_v54 = vsub.f32 %v371_v2, %v72_v52  ;;  %v90_v58 = vsub.f32 %v376_v3, %v72_v52  ;;  %v58_v33 = vsub.f32 %v371_v2, %v400_v23 }
 0x175   :  { %v98_v59 = vmul.f32 %v76_v54, %v76_v54  ;;  %v106_v6 = vmul.f32 %v90_v58, %v90_v58  ;;  %v94_v46 = vmul.f32 %v58_v33, %v58_v33 }
 0x177   :  { %193 = vrot.lane.b32.xlu1 %v426_v35, %s339_s15  ;;  %223 = vrot.lane.b32.xlu0 %v430_v36, %s339_s15 }
 0x17b   :  { %225 = vrot.lane.b32.xlu1 %v438_v38, %s339_s15  ;;  %179 = vrot.lane.b32.xlu0 %v441_v39, %s339_s15 }
 0x17f   :  { %181 = vrot.lane.b32.xlu1 %v449_v42, %s339_s15  ;;  %111 = vrot.lane.b32.xlu0 %v95_v45, %s338_s10 }
 0x183   :  { %113 = vrot.lane.b32.xlu1 %v96_v47, %s338_s10  ;;  %131 = vrot.lane.b32.xlu0 %v103_v48, %s338_s10  ;;  %v102_v47 = vmul.f32 %v86_v37, %v86_v37 }
 0x187   :  { %133 = vrot.lane.b32.xlu1 %v104_v49, %s338_s10 }
 0x1dd   :  { %v122_v56 = vpop.permute.xlu0 %121 }
 0x1de   :  { %v127_v57 = vadd.f32 %v122_v56, %v97_v53 }
 0x1e0   :  { %151 = vrot.lane.b32.xlu0 %v127_v57, %s339_s15 }
 0x1e1   :  { %v124_v61 = vpop.permute.xlu1 %123  ;;  %v142_v63 = vpop.permute.xlu0 %141 }
 0x1e2   :  { %v128_v62 = vadd.f32 %v124_v61, %v98_v59  ;;  %v147_v4 = vadd.f32 %v142_v63, %v105_v60 }
 0x1e4   :  { %153 = vrot.lane.b32.xlu1 %v128_v62, %s339_s15  ;;  %161 = vrot.lane.b32.xlu0 %v147_v4, %s339_s15 }
 0x1e5   :  { %v144_v7 = vpop.permute.xlu1 %143  ;;  %v192_v10 = vpop.permute.xlu0 %191 }
 0x1e6   :  { %v148_v8 = vadd.f32 %v144_v7, %v106_v6  ;;  %v474_v15 = vmax.f32 %v420_v34, %v192_v10  ;;  %v197_v2 = vmin.f32 %v420_v34, %v192_v10 }
 0x1e8   :  { %163 = vrot.lane.b32.xlu1 %v148_v8, %s339_s15  ;;  %211 = vrot.lane.b32.xlu0 %v205_v11, %s339_s15 }
 0x1e9   :  { %v194_v12 = vpop.permute.xlu1 %193  ;;  %v224_v14 = vpop.permute.xlu0 %223 }
 0x1ea   :  { %v477_v16 = vmax.f32 %v430_v36, %v224_v14  ;;  %v485_v19 = vmax.f32 %v426_v35, %v194_v12  ;;  %v198_v3 = vmin.f32 %v426_v35, %v194_v12  ;;  %v229_v57 = vmin.f32 %v430_v36, %v224_v14 }
 0x1ec   :  { %213 = vrot.lane.b32.xlu1 %v206_v13, %s339_s15  ;;  %v247_v5 = vmin.f32 %v474_v15, %v477_v16  ;;  %v249_v17 = vmax.f32 %v474_v15, %v477_v16 }
 0x1ed   :  { %v226_v18 = vpop.permute.xlu1 %225  ;;  %v180_v24 = vpop.permute.xlu0 %179 }
 0x1ee   :  { %v488_v9 = vmax.f32 %v438_v38, %v226_v18  ;;  %265 = vrot.lane.b32.xlu0 %v249_v17, %s339_s15  ;;  %v187_v51 = vmax.f32 %v441_v39, %v180_v24  ;;  %v230_v61 = vmin.f32 %v438_v38, %v226_v18  ;;  %v185_v62 = vmin.f32 %v441_v39, %v180_v24 }
 0x1f0   :  { %v248_v21 = vmin.f32 %v485_v19, %v488_v9  ;;  %v250_v22 = vmax.f32 %v485_v19, %v488_v9  ;;  %v201_v6 = vmin.f32 %v197_v2, %v187_v51  ;;  %v203_v7 = vmax.f32 %v197_v2, %v187_v51 }
 0x1f1   :  { %v182_v25 = vpop.permute.xlu1 %181  ;;  %v112_v26 = vpop.permute.xlu0 %111 }
 0x1f2   :  { %267 = vrot.lane.b32.xlu1 %v250_v22, %s339_s15  ;;  %v117_v43 = vadd.f32 %v112_v26, %v93_v40  ;;  %v188_v63 = vmax.f32 %v449_v42, %v182_v25  ;;  %v186_v10 = vmin.f32 %v449_v42, %v182_v25 }
 0x1f4   :  { %v202_v39 = vmin.f32 %v198_v3, %v188_v63  ;;  %v204_v22 = vmax.f32 %v198_v3, %v188_v63 }
 0x1f5   :  { %v114_v27 = vpop.permute.xlu1 %113  ;;  %v132_v28 = vpop.permute.xlu0 %131 }
 0x1f6   :  { %v137_v44 = vadd.f32 %v132_v28, %v101_v41  ;;  %v118_v50 = vadd.f32 %v114_v27, %v94_v46 }
 0x1f9   :  { %v134_v31 = vpop.permute.xlu1 %133 }
 0x1fa   :  { %v138_v1 = vadd.f32 %v134_v31, %v102_v47 }
 0x252   :  { %v152_v32 = vpop.permute.xlu0 %151 }
 0x253   :  { %v157_v0 = vadd.f32 %v152_v32, %v117_v43 }
 0x256   :  { %v154_v45 = vpop.permute.xlu1 %153  ;;  %v162_v48 = vpop.permute.xlu0 %161 }
 0x257   :  { %v167_v49 = vadd.f32 %v162_v48, %v137_v44  ;;  %v158_v54 = vadd.f32 %v154_v45, %v118_v50 }
 0x259   :  { %v169_v52 = vadd.f32 %v167_v49, %v157_v0 }
 0x25a   :  { %v164_v53 = vpop.permute.xlu1 %163  ;;  %v212_v56 = vpop.permute.xlu0 %211 }
 0x25b   :  { %v168_v55 = vadd.f32 %v164_v53, %v138_v1  ;;  %v171_v58 = vmul.f32 0.14285715, %v169_v52  ;;  %v217_v59 = vmin.f32 %v205_v11, %v212_v56  ;;  %v219_v60 = vmax.f32 %v205_v11, %v212_v56 }
 0x25d   :  { %v170_v4 = vadd.f32 %v168_v55, %v158_v54  ;;  %v233_v34 = vmin.f32 %v229_v57, %v219_v60  ;;  %v235_v8 = vmax.f32 %v229_v57, %v219_v60  ;;  %257 = vrot.lane.b32.xlu0 %v171_v58, %s340_s0  ;;  %v237_v11 = vmin.f32 %v185_v62, %v217_v59 }
 0x25e   :  { %v214_v35 = vpop.permute.xlu1 %213  ;;  %v239_v17 = vmax.f32 %v185_v62, %v217_v59 }
 0x25f   :  { %v172_v36 = vmul.f32 0.14285715, %v170_v4  ;;  %v218_v12 = vmin.f32 %v206_v13, %v214_v35  ;;  %v220_v14 = vmax.f32 %v206_v13, %v214_v35  ;;  %v241_v38 = vmin.f32 %v203_v7, %v235_v8 }
 0x260   :  { %v245_v18 = vmax.f32 %v201_v6, %v233_v34  ;;  %v266_v15 = vpop.permute.xlu0 %265 }
 0x261   :  { %v234_v24 = vmin.f32 %v230_v61, %v220_v14  ;;  %v236_v26 = vmax.f32 %v230_v61, %v220_v14  ;;  %259 = vrot.lane.b32.xlu1 %v172_v36, %s340_s0  ;;  %v243_v27 = vmax.f32 %v241_v38, %v239_v17  ;;  %273 = vrot.lane.b32.xlu0 %v237_v11, %s338_s10 }
 0x262   :  { %v251_v28 = vmin.f32 %v247_v5, %v245_v18  ;;  %v238_v42 = vmin.f32 %v186_v10, %v218_v12  ;;  %v240_v13 = vmax.f32 %v186_v10, %v218_v12 }
 0x263   :  { %v242_v25 = vmin.f32 %v204_v22, %v236_v26  ;;  %v246_v29 = vmax.f32 %v202_v39, %v234_v24 }
 0x264   :  { %v253_v30 = vmin.f32 %v251_v28, %v243_v27  ;;  %v268_v16 = vpop.permute.xlu1 %267 }
 0x265   :  { %v244_v31 = vmax.f32 %v242_v25, %v240_v13  ;;  %v252_v32 = vmin.f32 %v248_v21, %v246_v29  ;;  %275 = vrot.lane.b32.xlu1 %v238_v42, %s338_s10 }
 0x266   :  { %289 = vst.msk [vmem:[#allocation2 + $0x8] sm:$0xff] %vm279_vm0, %v253_v30 }
 0x267   :  { %v254_v33 = vmin.f32 %v252_v32, %v244_v31 }
 0x269   :  { %291 = vst.msk [vmem:[#allocation2 + $0x18] sm:$0xff] %vm279_vm0, %v254_v33 }
 0x2cf   :  { %v258_v5 = vpop.permute.xlu0 %257 }
 0x2d0   :  { %v280_v37 = vsel %vm279_vm0, %v396_v20, %v258_v5 }
 0x2d1   :  { %v283_v9 = vsel %vm282_vm1, %v280_v37, %v266_v15 }
 0x2d3   :  { %v260_v40 = vpop.permute.xlu1 %259  ;;  %v274_v21 = vpop.permute.xlu0 %273 }
 0x2d4   :  { %v281_v19 = vsel %vm279_vm0, %v400_v23, %v260_v40  ;;  %v286_v41 = vsel %vm285_vm2, %v283_v9, %v274_v21 }
 0x2d5   :  { %288 = vst [vmem:[#allocation2] sm:$0xff] %v286_v41  ;;  %v284_v43 = vsel %vm282_vm1, %v281_v19, %v268_v16 }
 0x2d7   :  { %v276_v44 = vpop.permute.xlu1 %275 }
 0x2d8   :  { %v287_v45 = vsel %vm285_vm2, %v284_v43, %v276_v44 }
 0x2d9   :  { %290 = vst [vmem:[#allocation2 + $0x10] sm:$0xff] %v287_v45 }
 0x2da   :  { %325 = shalt.err (!%p322_p4)
}
 0x2db   :  { %s326_s21 = scalar_lea.hbm %s541_s1, 512 }
 0x2dc   :  { %p327_p5 = scmp.ne.s32.totalorder %s541_s1, %s326_s21  ;;  %p330_p6 = scmp.lt.u32.totalorder %s326_s21, %s541_s1 }
 0x2de   :  { %p332_p7 = pnand %p330_p6, %p327_p5 }
 0x2e0   :  { %335 = shalt.err (!%p332_p7)
}
 0x2e1   :  { %s342_s26 = smov 256   ;;  %s343_s27 = smov 16  }
 0x2e2   :  { %303 = dma.vmem_to_hbm [thread:$0]  %s298_s17, 512, %s541_s1, [#allocation3], %s342_s26, %s342_s26, %s343_s27  }
 0x2e3   :  { %336 = dma.done.wait [#allocation3], 512  }
 0x2e4   :  { %337 = vsyncadd [#allocation3], 4294966784 }
 0x2e5   :  { %307 = vsyncpa [#allocation3], 1 }

</bundles_post_ra>
